<compile_context>
chip_gen: v5e
topology: v5e:2x2
jax: 0.10.0
libtpu: 0.0.40
codegen_flags: <defaults>
</compile_context>

<pallas_src>
import numpy as np

import jax
import jax.numpy as jnp
from jax.experimental import pallas as pl
from jax.experimental.pallas import tpu as pltpu


def _model_kernel(x_ref, pw_ref, bias_ref, lnp_ref, wqkv_ref, w1_ref, b1_ref,
                  w2_ref, b2_ref, wout_ref, bout_ref, out_ref):
    N, D = x_ref.shape            # N = BB*T flattened (batch*seq) rows
    BB, _ = out_ref.shape
    T = N // BB
    H = w1_ref.shape[1]
    f32, bf16 = jnp.float32, jnp.bfloat16
    inv_d = 1.0 / D

    x = x_ref[...]                # (N, D) f32 residual stream
    pw = pw_ref[...]              # (N, 1) f32 pooling weights (mask/len folded)

    g1, be1 = lnp_ref[0:1, :], lnp_ref[1:2, :]
    g2, be2 = lnp_ref[2:3, :], lnp_ref[3:4, :]

    # ---- LN1 (single-pass stats) ----
    mu = jnp.sum(x, axis=-1, keepdims=True) * inv_d
    var = jnp.sum(x * x, axis=-1, keepdims=True) * inv_d - mu * mu
    xn = (x - mu) * jax.lax.rsqrt(var + 1e-5) * g1 + be1

    # ---- Q/K/V projections (bf16 operands, f32 accumulation) ----
    xn_b = xn.astype(bf16)
    q = jnp.dot(xn_b, wqkv_ref[0], preferred_element_type=f32)     # (N, D)
    k = jnp.dot(xn_b, wqkv_ref[1], preferred_element_type=f32)
    v = jnp.dot(xn_b, wqkv_ref[2], preferred_element_type=f32)

    # ---- block-diagonal attention on the flattened slab ----
    # scores[i, j] = q[i] . k[j] * D^-0.5 ; bias masks keys outside i's batch row.
    scores = jax.lax.dot_general(
        q.astype(bf16), k.astype(bf16), (((1,), (1,)), ((), ())),
        preferred_element_type=f32) * (D ** -0.5)                  # (N, N)
    scores = scores + bias_ref[...]
    scores = scores - jnp.max(scores, axis=-1, keepdims=True)
    p = jnp.exp(scores)
    p = p * pl.reciprocal(jnp.sum(p, axis=-1, keepdims=True), approx=True)
    att = jnp.dot(p.astype(bf16), v.astype(bf16), preferred_element_type=f32)
    x = x + att                                                    # (N, D)

    # ---- LN2 (single-pass stats) + FFN first matmul ----
    mu2 = jnp.sum(x, axis=-1, keepdims=True) * inv_d
    var2 = jnp.sum(x * x, axis=-1, keepdims=True) * inv_d - mu2 * mu2
    xn2 = (x - mu2) * jax.lax.rsqrt(var2 + 1e-5) * g2 + be2
    h = jnp.dot(xn2.astype(bf16), w1_ref[...],
                preferred_element_type=f32) + b1_ref[...]
    h = jnp.maximum(h, 0.0)                                        # (N, H)

    # ---- masked-mean pool hoisted through the second FFN matmul ----
    # pool(x + h@W2 + b2) == pool(x) + pool(h)@W2 + sum(pw)*b2   (pool is linear;
    # sum(pw) is 1 for real rows, 0 for batch-padding rows).
    pooled_x = jnp.sum((x * pw).reshape(BB, T, D), axis=1)         # (BB, D)
    pooled_h = jnp.sum((h * pw).reshape(BB, T, H), axis=1)         # (BB, H)
    pw_sum = jnp.sum(pw.reshape(BB, T, 1), axis=1)                 # (BB, 1)
    pooled = (pooled_x
              + jnp.dot(pooled_h.astype(bf16), w2_ref[...],
                        preferred_element_type=f32)
              + pw_sum * b2_ref[...])                              # (BB, D)

    # ---- output linear (lane-dense: O padded to 128 in the wrapper) ----
    out_ref[...] = (jnp.dot(pooled.astype(bf16), wout_ref[...],
                            preferred_element_type=f32) + bout_ref[...])


def simple_self_attention_forward(tokens, params):
    B, T = tokens.shape
    D = params["emb"].shape[1]
    H = 4 * D
    O = params["w_out"].shape[1]
    OP = ((O + 127) // 128) * 128          # lane-dense output width
    f32, bf16 = jnp.float32, jnp.bfloat16

    # ---- glue (plain JAX): embedding gather, pooling weights, weight packing ----
    x0 = (params["emb"][tokens] + params["pos"][:T][None]).astype(f32)   # (B, T, D)

    lengths = jnp.sum(tokens != 0, axis=1)                               # (B,)
    mask = (jnp.arange(T)[None, :] < lengths[:, None]).astype(f32)       # (B, T)
    pw = mask / jnp.maximum(lengths, 1).astype(f32)[:, None]             # (B, T)

    lnp = jnp.concatenate([params["g1"], params["be1"],
                           params["g2"], params["be2"]], axis=0)         # (4, D) f32
    wqkv = jnp.stack([params["wq"], params["wk"], params["wv"]], 0).astype(bf16)
    w1 = params["w1"].astype(bf16)                                       # (D, H)
    w2 = params["w2"].astype(bf16)                                       # (H, D)
    wout = jnp.pad(params["w_out"], ((0, 0), (0, OP - O))).astype(bf16)  # (D, OP)
    bout = jnp.pad(params["b_out"], ((0, 0), (0, OP - O)))               # (1, OP)
    b1, b2 = params["b1"], params["b2"]                                  # f32 biases

    # ---- batch blocking: ~512 flattened rows per grid step ----
    target_rows = 512
    BB = max(1, min(B, max(1, target_rows // T)))
    if BB < B:
        # multiple grid steps -> blocked sublane dims must be multiples of 8
        BB = (BB // 8) * 8 if BB >= 8 else B
    # v7x: keep >=2 grid steps for megacore sharding when slabs stay >=128 rows
    half = -(-B // 2)
    if half < BB and half % 8 == 0 and half * T >= 128:
        BB = half
    NB = -(-B // BB)
    B_pad = NB * BB
    Nc = BB * T

    if B_pad != B:
        x0 = jnp.pad(x0, ((0, B_pad - B), (0, 0), (0, 0)))
        pw = jnp.pad(pw, ((0, B_pad - B), (0, 0)))

    x_flat = x0.reshape(B_pad * T, D)                                    # (B_pad*T, D)
    pw_flat = pw.reshape(B_pad * T, 1)                                   # (B_pad*T, 1)

    # block-diagonal attention bias: 0 within a batch row's T x T block, -1e30 off
    blk = jnp.arange(Nc) // T
    attn_bias = jnp.where(blk[:, None] == blk[None, :], 0.0, -1e30).astype(f32)

    def const(shape):
        zeros = (0,) * len(shape)
        return pl.BlockSpec(shape, lambda g, z=zeros: z)

    out = pl.pallas_call(
        _model_kernel,
        out_shape=jax.ShapeDtypeStruct((B_pad, OP), f32),
        grid_spec=pltpu.PrefetchScalarGridSpec(
            num_scalar_prefetch=0,
            grid=(NB,),
            in_specs=[
                pl.BlockSpec((Nc, D), lambda g: (g, 0)),   # embedded activations
                pl.BlockSpec((Nc, 1), lambda g: (g, 0)),   # pooling weights
                const((Nc, Nc)),       # block-diag attention bias
                const((4, D)),         # packed LN gamma/beta
                const((3, D, D)),      # stacked Wq/Wk/Wv (bf16)
                const((D, H)),         # FFN W1 (bf16)
                const((1, H)),         # FFN b1
                const((H, D)),         # FFN W2 (bf16)
                const((1, D)),         # FFN b2
                const((D, OP)),        # output W (bf16, lane padded)
                const((1, OP)),        # output b (lane padded)
            ],
            out_specs=pl.BlockSpec((BB, OP), lambda g: (g, 0)),
        ),
        compiler_params=pltpu.CompilerParams(
            dimension_semantics=("parallel",),
            vmem_limit_bytes=32 * 1024 * 1024,     # explicit budget (v7x: 64 MiB phys)
        ),
    )(x_flat, pw_flat, attn_bias, lnp, wqkv, w1, b1, w2, b2, wout, bout)

    return out[:B, :O]


def _reference_forward(tokens, params):
    """Pure-JAX (f32) reference of the PyTorch forward (eval mode)."""
    B, T = tokens.shape
    D = params["emb"].shape[1]
    x = params["emb"][tokens] + params["pos"][:T][None]

    def ln(y, g, b):
        mu = jnp.mean(y, axis=-1, keepdims=True)
        var = jnp.mean((y - mu) ** 2, axis=-1, keepdims=True)
        return (y - mu) / jnp.sqrt(var + 1e-5) * g + b

    xn = ln(x, params["g1"], params["be1"])
    q = xn @ params["wq"]; k = xn @ params["wk"]; v = xn @ params["wv"]
    wei = jax.nn.softmax((q @ jnp.swapaxes(k, -1, -2)) * (D ** -0.5), axis=-1)
    x = x + wei @ v
    xn2 = ln(x, params["g2"], params["be2"])
    h = jnp.maximum(xn2 @ params["w1"] + params["b1"], 0.0)
    x = x + h @ params["w2"] + params["b2"]
    lengths = jnp.sum(tokens != 0, axis=1)
    mask = (jnp.arange(T)[None, :] < lengths[:, None]).astype(x.dtype)[..., None]
    pooled = jnp.sum(x * mask, axis=1) / jnp.maximum(lengths, 1)[:, None]
    return pooled @ params["w_out"] + params["b_out"]


def make_params(key, vocab, dim, max_length, output_size):
    ks = jax.random.split(key, 8)
    D = dim
    return {
        "emb":   jax.random.normal(ks[0], (vocab, D), jnp.float32) * 0.1,
        "pos":   jax.random.normal(ks[1], (max_length, D), jnp.float32) * 0.1,
        "wq":    jax.random.normal(ks[2], (D, D), jnp.float32) * (1.0 / np.sqrt(D)),
        "wk":    jax.random.normal(ks[3], (D, D), jnp.float32) * (1.0 / np.sqrt(D)),
        "wv":    jax.random.normal(ks[4], (D, D), jnp.float32) * (1.0 / np.sqrt(D)),
        "g1":    jnp.ones((1, D), jnp.float32),
        "be1":   jnp.zeros((1, D), jnp.float32),
        "g2":    jnp.ones((1, D), jnp.float32),
        "be2":   jnp.zeros((1, D), jnp.float32),
        "w1":    jax.random.normal(ks[5], (D, 4 * D), jnp.float32) * (1.0 / np.sqrt(D)),
        "b1":    jnp.zeros((1, 4 * D), jnp.float32),
        "w2":    jax.random.normal(ks[6], (4 * D, D), jnp.float32) * (1.0 / np.sqrt(4 * D)),
        "b2":    jnp.zeros((1, D), jnp.float32),
        "w_out": jax.random.normal(ks[7], (D, output_size), jnp.float32) * (1.0 / np.sqrt(D)),
        "b_out": jnp.zeros((1, output_size), jnp.float32),
    }


if __name__ == "__main__":
    B, T, D = 2, 8, 32
    vocab, max_length, output_size = 50, 60, 8

    key = jax.random.PRNGKey(0)
    kp, kt = jax.random.split(key)
    params = make_params(kp, vocab, D, max_length, output_size)

    tokens = jax.random.randint(kt, (B, T), 1, vocab, dtype=jnp.int32)
    tokens = tokens.at[0, 5:].set(0)   # padding on first row -> length 5
    tokens = tokens.at[1, 7:].set(0)   # padding on second row -> length 7

    logits = simple_self_attention_forward(tokens, params)
    logits = jax.block_until_ready(logits)

    ref = _reference_forward(tokens, params)
    # Tolerance accounts for bf16 MXU operands (per perf review) and the EUP
    # approximate reciprocal in the softmax denominator; reference is pure f32.
    np.testing.assert_allclose(np.asarray(logits), np.asarray(ref),
                               rtol=3e-2, atol=3e-2)

    print("KERNEL_OK")
</pallas_src>

<mosaic_0001>
module attributes {stable_mosaic.version = 11 : i64} {
  func.func @_model_kernel(%arg0: i32, %arg1: memref<16x32xf32, #tpu.memory_space<vmem>>, %arg2: memref<16x1xf32, #tpu.memory_space<vmem>>, %arg3: memref<16x16xf32, #tpu.memory_space<vmem>>, %arg4: memref<4x32xf32, #tpu.memory_space<vmem>>, %arg5: memref<3x32x32xbf16, #tpu.memory_space<vmem>>, %arg6: memref<32x128xbf16, #tpu.memory_space<vmem>>, %arg7: memref<1x128xf32, #tpu.memory_space<vmem>>, %arg8: memref<128x32xbf16, #tpu.memory_space<vmem>>, %arg9: memref<1x32xf32, #tpu.memory_space<vmem>>, %arg10: memref<32x128xbf16, #tpu.memory_space<vmem>>, %arg11: memref<1x128xf32, #tpu.memory_space<vmem>>, %arg12: memref<2x128xf32, #tpu.memory_space<vmem>>) attributes {dimension_semantics = [#tpu.dimension_semantics<parallel>], iteration_bounds = array<i64: 1>, scalar_prefetch = 0 : i64, scratch_operands = 0 : i64, tpu.core_type = #tpu.core_type<tc>, window_params = [{transform_indices = @transform_0, window_bounds = array<i64: 16, 32>}, {transform_indices = @transform_1, window_bounds = array<i64: 16, 1>}, {pipeline_mode = #tpu.pipeline_mode<synchronous>, transform_indices = @transform_2, window_bounds = array<i64: 16, 16>}, {pipeline_mode = #tpu.pipeline_mode<synchronous>, transform_indices = @transform_3, window_bounds = array<i64: 4, 32>}, {pipeline_mode = #tpu.pipeline_mode<synchronous>, transform_indices = @transform_4, window_bounds = array<i64: 3, 32, 32>}, {pipeline_mode = #tpu.pipeline_mode<synchronous>, transform_indices = @transform_5, window_bounds = array<i64: 32, 128>}, {pipeline_mode = #tpu.pipeline_mode<synchronous>, transform_indices = @transform_6, window_bounds = array<i64: 1, 128>}, {pipeline_mode = #tpu.pipeline_mode<synchronous>, transform_indices = @transform_7, window_bounds = array<i64: 128, 32>}, {pipeline_mode = #tpu.pipeline_mode<synchronous>, transform_indices = @transform_8, window_bounds = array<i64: 1, 32>}, {pipeline_mode = #tpu.pipeline_mode<synchronous>, transform_indices = @transform_9, window_bounds = array<i64: 32, 128>}, {pipeline_mode = #tpu.pipeline_mode<synchronous>, transform_indices = @transform_10, window_bounds = array<i64: 1, 128>}, {transform_indices = @transform_11, window_bounds = array<i64: 2, 128>}]} {
    %c0 = arith.constant 0 : index
    %c0_0 = arith.constant 0 : index
    %0 = vector.load %arg1[%c0, %c0_0] : memref<16x32xf32, #tpu.memory_space<vmem>>, vector<16x32xf32>
    %c0_1 = arith.constant 0 : index
    %c0_2 = arith.constant 0 : index
    %1 = vector.load %arg2[%c0_1, %c0_2] : memref<16x1xf32, #tpu.memory_space<vmem>>, vector<16x1xf32>
    %c0_3 = arith.constant 0 : index
    %c0_4 = arith.constant 0 : index
    %2 = vector.load %arg4[%c0_3, %c0_4] : memref<4x32xf32, #tpu.memory_space<vmem>>, vector<1x32xf32>
    %c1 = arith.constant 1 : index
    %c0_5 = arith.constant 0 : index
    %3 = vector.load %arg4[%c1, %c0_5] : memref<4x32xf32, #tpu.memory_space<vmem>>, vector<1x32xf32>
    %c2 = arith.constant 2 : index
    %c0_6 = arith.constant 0 : index
    %4 = vector.load %arg4[%c2, %c0_6] : memref<4x32xf32, #tpu.memory_space<vmem>>, vector<1x32xf32>
    %c3 = arith.constant 3 : index
    %c0_7 = arith.constant 0 : index
    %5 = vector.load %arg4[%c3, %c0_7] : memref<4x32xf32, #tpu.memory_space<vmem>>, vector<1x32xf32>
    %cst = arith.constant dense<0.000000e+00> : vector<16xf32>
    %6 = vector.multi_reduction <add>, %0, %cst [1] : vector<16x32xf32> to vector<16xf32>
    %7 = vector.shape_cast %6 : vector<16xf32> to vector<16x1xf32>
    %cst_8 = arith.constant 3.125000e-02 : f32
    %8 = vector.broadcast %cst_8 : f32 to vector<16x1xf32>
    %9 = arith.mulf %7, %8 : vector<16x1xf32>
    %10 = arith.mulf %0, %0 : vector<16x32xf32>
    %cst_9 = arith.constant dense<0.000000e+00> : vector<16xf32>
    %11 = vector.multi_reduction <add>, %10, %cst_9 [1] : vector<16x32xf32> to vector<16xf32>
    %12 = vector.shape_cast %11 : vector<16xf32> to vector<16x1xf32>
    %cst_10 = arith.constant 3.125000e-02 : f32
    %13 = vector.broadcast %cst_10 : f32 to vector<16x1xf32>
    %14 = arith.mulf %12, %13 : vector<16x1xf32>
    %15 = arith.mulf %9, %9 : vector<16x1xf32>
    %16 = arith.subf %14, %15 : vector<16x1xf32>
    %17 = vector.broadcast %9 : vector<16x1xf32> to vector<16x32xf32>
    %18 = arith.subf %0, %17 : vector<16x32xf32>
    %cst_11 = arith.constant 9.99999974E-6 : f32
    %19 = vector.broadcast %cst_11 : f32 to vector<16x1xf32>
    %20 = arith.addf %16, %19 : vector<16x1xf32>
    %21 = math.rsqrt %20 : vector<16x1xf32>
    %22 = vector.broadcast %21 : vector<16x1xf32> to vector<16x32xf32>
    %23 = arith.mulf %18, %22 : vector<16x32xf32>
    %24 = vector.broadcast %2 : vector<1x32xf32> to vector<16x32xf32>
    %25 = arith.mulf %23, %24 : vector<16x32xf32>
    %26 = vector.broadcast %3 : vector<1x32xf32> to vector<16x32xf32>
    %27 = arith.addf %25, %26 : vector<16x32xf32>
    %28 = arith.truncf %27 : vector<16x32xf32> to vector<16x32xbf16>
    %c0_12 = arith.constant 0 : index
    %c0_13 = arith.constant 0 : index
    %c0_14 = arith.constant 0 : index
    %29 = vector.load %arg5[%c0_12, %c0_13, %c0_14] : memref<3x32x32xbf16, #tpu.memory_space<vmem>>, vector<1x32x32xbf16>
    %30 = vector.shape_cast %29 : vector<1x32x32xbf16> to vector<32x32xbf16>
    %cst_15 = arith.constant dense<0.000000e+00> : vector<16x32xf32>
    %31 = tpu.matmul %28, %30, %cst_15 {dimension_numbers = #tpu.dot_dimension_numbers<[1], [0], [0], [1], [0, 0, 1, 1], [], []>} : vector<16x32xbf16>, vector<32x32xbf16>, vector<16x32xf32> -> vector<16x32xf32>
    %c1_16 = arith.constant 1 : index
    %c0_17 = arith.constant 0 : index
    %c0_18 = arith.constant 0 : index
    %32 = vector.load %arg5[%c1_16, %c0_17, %c0_18] : memref<3x32x32xbf16, #tpu.memory_space<vmem>>, vector<1x32x32xbf16>
    %33 = vector.shape_cast %32 : vector<1x32x32xbf16> to vector<32x32xbf16>
    %cst_19 = arith.constant dense<0.000000e+00> : vector<16x32xf32>
    %34 = tpu.matmul %28, %33, %cst_19 {dimension_numbers = #tpu.dot_dimension_numbers<[1], [0], [0], [1], [0, 0, 1, 1], [], []>} : vector<16x32xbf16>, vector<32x32xbf16>, vector<16x32xf32> -> vector<16x32xf32>
    %c2_20 = arith.constant 2 : index
    %c0_21 = arith.constant 0 : index
    %c0_22 = arith.constant 0 : index
    %35 = vector.load %arg5[%c2_20, %c0_21, %c0_22] : memref<3x32x32xbf16, #tpu.memory_space<vmem>>, vector<1x32x32xbf16>
    %36 = vector.shape_cast %35 : vector<1x32x32xbf16> to vector<32x32xbf16>
    %cst_23 = arith.constant dense<0.000000e+00> : vector<16x32xf32>
    %37 = tpu.matmul %28, %36, %cst_23 {dimension_numbers = #tpu.dot_dimension_numbers<[1], [0], [0], [1], [0, 0, 1, 1], [], []>} : vector<16x32xbf16>, vector<32x32xbf16>, vector<16x32xf32> -> vector<16x32xf32>
    %38 = arith.truncf %31 : vector<16x32xf32> to vector<16x32xbf16>
    %39 = arith.truncf %34 : vector<16x32xf32> to vector<16x32xbf16>
    %cst_24 = arith.constant dense<0.000000e+00> : vector<16x16xf32>
    %40 = tpu.matmul %38, %39, %cst_24 {dimension_numbers = #tpu.dot_dimension_numbers<[1], [1], [0], [0], [0, 0, 1, 0], [], []>} : vector<16x32xbf16>, vector<16x32xbf16>, vector<16x16xf32> -> vector<16x16xf32>
    %cst_25 = arith.constant 0.176776692 : f32
    %41 = vector.broadcast %cst_25 : f32 to vector<16x16xf32>
    %42 = arith.mulf %40, %41 : vector<16x16xf32>
    %c0_26 = arith.constant 0 : index
    %c0_27 = arith.constant 0 : index
    %43 = vector.load %arg3[%c0_26, %c0_27] : memref<16x16xf32, #tpu.memory_space<vmem>>, vector<16x16xf32>
    %44 = arith.addf %42, %43 : vector<16x16xf32>
    %cst_28 = arith.constant dense<0xFF800000> : vector<16xf32>
    %45 = vector.multi_reduction <maximumf>, %44, %cst_28 [1] : vector<16x16xf32> to vector<16xf32>
    %46 = vector.shape_cast %45 : vector<16xf32> to vector<16x1xf32>
    %47 = vector.broadcast %46 : vector<16x1xf32> to vector<16x16xf32>
    %48 = arith.subf %44, %47 : vector<16x16xf32>
    %49 = math.exp %48 : vector<16x16xf32>
    %cst_29 = arith.constant dense<0.000000e+00> : vector<16xf32>
    %50 = vector.multi_reduction <add>, %49, %cst_29 [1] : vector<16x16xf32> to vector<16xf32>
    %51 = vector.shape_cast %50 : vector<16xf32> to vector<16x1xf32>
    %52 = tpu.reciprocal %51 {approx = true} : vector<16x1xf32> -> vector<16x1xf32>
    %53 = vector.broadcast %52 : vector<16x1xf32> to vector<16x16xf32>
    %54 = arith.mulf %49, %53 : vector<16x16xf32>
    %55 = arith.truncf %54 : vector<16x16xf32> to vector<16x16xbf16>
    %56 = arith.truncf %37 : vector<16x32xf32> to vector<16x32xbf16>
    %cst_30 = arith.constant dense<0.000000e+00> : vector<16x32xf32>
    %57 = tpu.matmul %55, %56, %cst_30 {dimension_numbers = #tpu.dot_dimension_numbers<[1], [0], [0], [1], [0, 0, 1, 1], [], []>} : vector<16x16xbf16>, vector<16x32xbf16>, vector<16x32xf32> -> vector<16x32xf32>
    %58 = arith.addf %0, %57 : vector<16x32xf32>
    %cst_31 = arith.constant dense<0.000000e+00> : vector<16xf32>
    %59 = vector.multi_reduction <add>, %58, %cst_31 [1] : vector<16x32xf32> to vector<16xf32>
    %60 = vector.shape_cast %59 : vector<16xf32> to vector<16x1xf32>
    %cst_32 = arith.constant 3.125000e-02 : f32
    %61 = vector.broadcast %cst_32 : f32 to vector<16x1xf32>
    %62 = arith.mulf %60, %61 : vector<16x1xf32>
    %63 = arith.mulf %58, %58 : vector<16x32xf32>
    %cst_33 = arith.constant dense<0.000000e+00> : vector<16xf32>
    %64 = vector.multi_reduction <add>, %63, %cst_33 [1] : vector<16x32xf32> to vector<16xf32>
    %65 = vector.shape_cast %64 : vector<16xf32> to vector<16x1xf32>
    %cst_34 = arith.constant 3.125000e-02 : f32
    %66 = vector.broadcast %cst_34 : f32 to vector<16x1xf32>
    %67 = arith.mulf %65, %66 : vector<16x1xf32>
    %68 = arith.mulf %62, %62 : vector<16x1xf32>
    %69 = arith.subf %67, %68 : vector<16x1xf32>
    %70 = vector.broadcast %62 : vector<16x1xf32> to vector<16x32xf32>
    %71 = arith.subf %58, %70 : vector<16x32xf32>
    %cst_35 = arith.constant 9.99999974E-6 : f32
    %72 = vector.broadcast %cst_35 : f32 to vector<16x1xf32>
    %73 = arith.addf %69, %72 : vector<16x1xf32>
    %74 = math.rsqrt %73 : vector<16x1xf32>
    %75 = vector.broadcast %74 : vector<16x1xf32> to vector<16x32xf32>
    %76 = arith.mulf %71, %75 : vector<16x32xf32>
    %77 = vector.broadcast %4 : vector<1x32xf32> to vector<16x32xf32>
    %78 = arith.mulf %76, %77 : vector<16x32xf32>
    %79 = vector.broadcast %5 : vector<1x32xf32> to vector<16x32xf32>
    %80 = arith.addf %78, %79 : vector<16x32xf32>
    %81 = arith.truncf %80 : vector<16x32xf32> to vector<16x32xbf16>
    %c0_36 = arith.constant 0 : index
    %c0_37 = arith.constant 0 : index
    %82 = vector.load %arg6[%c0_36, %c0_37] : memref<32x128xbf16, #tpu.memory_space<vmem>>, vector<32x128xbf16>
    %cst_38 = arith.constant dense<0.000000e+00> : vector<16x128xf32>
    %83 = tpu.matmul %81, %82, %cst_38 {dimension_numbers = #tpu.dot_dimension_numbers<[1], [0], [0], [1], [0, 0, 1, 1], [], []>} : vector<16x32xbf16>, vector<32x128xbf16>, vector<16x128xf32> -> vector<16x128xf32>
    %c0_39 = arith.constant 0 : index
    %c0_40 = arith.constant 0 : index
    %84 = vector.load %arg7[%c0_39, %c0_40] : memref<1x128xf32, #tpu.memory_space<vmem>>, vector<1x128xf32>
    %85 = vector.broadcast %84 : vector<1x128xf32> to vector<16x128xf32>
    %86 = arith.addf %83, %85 : vector<16x128xf32>
    %cst_41 = arith.constant 0.000000e+00 : f32
    %87 = vector.broadcast %cst_41 : f32 to vector<16x128xf32>
    %88 = arith.maximumf %86, %87 : vector<16x128xf32>
    %89 = vector.broadcast %1 : vector<16x1xf32> to vector<16x32xf32>
    %90 = arith.mulf %58, %89 : vector<16x32xf32>
    %91 = vector.shape_cast %90 : vector<16x32xf32> to vector<2x8x32xf32>
    %cst_42 = arith.constant dense<0.000000e+00> : vector<2x32xf32>
    %92 = vector.multi_reduction <add>, %91, %cst_42 [1] : vector<2x8x32xf32> to vector<2x32xf32>
    %93 = vector.broadcast %1 : vector<16x1xf32> to vector<16x128xf32>
    %94 = arith.mulf %88, %93 : vector<16x128xf32>
    %95 = vector.shape_cast %94 : vector<16x128xf32> to vector<2x8x128xf32>
    %cst_43 = arith.constant dense<0.000000e+00> : vector<2x128xf32>
    %96 = vector.multi_reduction <add>, %95, %cst_43 [1] : vector<2x8x128xf32> to vector<2x128xf32>
    %97 = vector.shape_cast %1 : vector<16x1xf32> to vector<2x8x1xf32>
    %cst_44 = arith.constant dense<0.000000e+00> : vector<2x1xf32>
    %98 = vector.multi_reduction <add>, %97, %cst_44 [1] : vector<2x8x1xf32> to vector<2x1xf32>
    %99 = arith.truncf %96 : vector<2x128xf32> to vector<2x128xbf16>
    %c0_45 = arith.constant 0 : index
    %c0_46 = arith.constant 0 : index
    %100 = vector.load %arg8[%c0_45, %c0_46] : memref<128x32xbf16, #tpu.memory_space<vmem>>, vector<128x32xbf16>
    %cst_47 = arith.constant dense<0.000000e+00> : vector<2x32xf32>
    %101 = tpu.matmul %99, %100, %cst_47 {dimension_numbers = #tpu.dot_dimension_numbers<[1], [0], [0], [1], [0, 0, 1, 1], [], []>} : vector<2x128xbf16>, vector<128x32xbf16>, vector<2x32xf32> -> vector<2x32xf32>
    %102 = arith.addf %92, %101 : vector<2x32xf32>
    %c0_48 = arith.constant 0 : index
    %c0_49 = arith.constant 0 : index
    %103 = vector.load %arg9[%c0_48, %c0_49] : memref<1x32xf32, #tpu.memory_space<vmem>>, vector<1x32xf32>
    %104 = vector.broadcast %98 : vector<2x1xf32> to vector<2x32xf32>
    %105 = vector.broadcast %103 : vector<1x32xf32> to vector<2x32xf32>
    %106 = arith.mulf %104, %105 : vector<2x32xf32>
    %107 = arith.addf %102, %106 : vector<2x32xf32>
    %108 = arith.truncf %107 : vector<2x32xf32> to vector<2x32xbf16>
    %c0_50 = arith.constant 0 : index
    %c0_51 = arith.constant 0 : index
    %109 = vector.load %arg10[%c0_50, %c0_51] : memref<32x128xbf16, #tpu.memory_space<vmem>>, vector<32x128xbf16>
    %cst_52 = arith.constant dense<0.000000e+00> : vector<2x128xf32>
    %110 = tpu.matmul %108, %109, %cst_52 {dimension_numbers = #tpu.dot_dimension_numbers<[1], [0], [0], [1], [0, 0, 1, 1], [], []>} : vector<2x32xbf16>, vector<32x128xbf16>, vector<2x128xf32> -> vector<2x128xf32>
    %c0_53 = arith.constant 0 : index
    %c0_54 = arith.constant 0 : index
    %111 = vector.load %arg11[%c0_53, %c0_54] : memref<1x128xf32, #tpu.memory_space<vmem>>, vector<1x128xf32>
    %112 = vector.broadcast %111 : vector<1x128xf32> to vector<2x128xf32>
    %113 = arith.addf %110, %112 : vector<2x128xf32>
    %c0_55 = arith.constant 0 : index
    %c0_56 = arith.constant 0 : index
    %114 = vector.load %arg12[%c0_55, %c0_56] : memref<2x128xf32, #tpu.memory_space<vmem>>, vector<2x128xf32>
    tpu.vector_store %arg12[%c0_55, %c0_56], %113 {strides = array<i32>} : memref<2x128xf32, #tpu.memory_space<vmem>>, vector<2x128xf32>,
    return
  }
  func.func @transform_0(%arg0: i32) -> (i32, i32) {
    %c0_i32 = arith.constant 0 : i32
    %c0_i32_0 = arith.constant 0 : i32
    return %arg0, %c0_i32 : i32, i32
  }
  func.func @transform_1(%arg0: i32) -> (i32, i32) {
    %c0_i32 = arith.constant 0 : i32
    %c0_i32_0 = arith.constant 0 : i32
    return %arg0, %c0_i32 : i32, i32
  }
  func.func @transform_2(%arg0: i32) -> (i32, i32) {
    %c0_i32 = arith.constant 0 : i32
    %c0_i32_0 = arith.constant 0 : i32
    %c0_i32_1 = arith.constant 0 : i32
    return %c0_i32, %c0_i32_0 : i32, i32
  }
  func.func @transform_3(%arg0: i32) -> (i32, i32) {
    %c0_i32 = arith.constant 0 : i32
    %c0_i32_0 = arith.constant 0 : i32
    %c0_i32_1 = arith.constant 0 : i32
    return %c0_i32, %c0_i32_0 : i32, i32
  }
  func.func @transform_4(%arg0: i32) -> (i32, i32, i32) {
    %c0_i32 = arith.constant 0 : i32
    %c0_i32_0 = arith.constant 0 : i32
    %c0_i32_1 = arith.constant 0 : i32
    %c0_i32_2 = arith.constant 0 : i32
    return %c0_i32, %c0_i32_0, %c0_i32_1 : i32, i32, i32
  }
  func.func @transform_5(%arg0: i32) -> (i32, i32) {
    %c0_i32 = arith.constant 0 : i32
    %c0_i32_0 = arith.constant 0 : i32
    %c0_i32_1 = arith.constant 0 : i32
    return %c0_i32, %c0_i32_0 : i32, i32
  }
  func.func @transform_6(%arg0: i32) -> (i32, i32) {
    %c0_i32 = arith.constant 0 : i32
    %c0_i32_0 = arith.constant 0 : i32
    %c0_i32_1 = arith.constant 0 : i32
    return %c0_i32, %c0_i32_0 : i32, i32
  }
  func.func @transform_7(%arg0: i32) -> (i32, i32) {
    %c0_i32 = arith.constant 0 : i32
    %c0_i32_0 = arith.constant 0 : i32
    %c0_i32_1 = arith.constant 0 : i32
    return %c0_i32, %c0_i32_0 : i32, i32
  }
  func.func @transform_8(%arg0: i32) -> (i32, i32) {
    %c0_i32 = arith.constant 0 : i32
    %c0_i32_0 = arith.constant 0 : i32
    %c0_i32_1 = arith.constant 0 : i32
    return %c0_i32, %c0_i32_0 : i32, i32
  }
  func.func @transform_9(%arg0: i32) -> (i32, i32) {
    %c0_i32 = arith.constant 0 : i32
    %c0_i32_0 = arith.constant 0 : i32
    %c0_i32_1 = arith.constant 0 : i32
    return %c0_i32, %c0_i32_0 : i32, i32
  }
  func.func @transform_10(%arg0: i32) -> (i32, i32) {
    %c0_i32 = arith.constant 0 : i32
    %c0_i32_0 = arith.constant 0 : i32
    %c0_i32_1 = arith.constant 0 : i32
    return %c0_i32, %c0_i32_0 : i32, i32
  }
  func.func @transform_11(%arg0: i32) -> (i32, i32) {
    %c0_i32 = arith.constant 0 : i32
    %c0_i32_0 = arith.constant 0 : i32
    return %arg0, %c0_i32 : i32, i32
  }
}

</mosaic_0001>

<bundles_post_ra>
// kernel: tpu_custom_call.1
= control target key start
LH: loop header
LB: loop body
LE: loop exit
PB: predicated region body
PF: predicated region fallthrough
CT: control target
= control target key end

     0   :  { %16 = vsyncpa [#allocation3], 0  ;;  %s1058_s0 = inlined_call_operand.vmem [shape: f32[16,32], index: 0, kind: input, shape index: {}]   ;;  %s1059_s1 = inlined_call_operand.vmem [shape: f32[16,1], index: 1, kind: input, shape index: {}]   ;;  %s1060_s2 = inlined_call_operand.vmem [shape: f32[16,16], index: 2, kind: input, shape index: {}]   ;;  %s1061_s3 = inlined_call_operand.vmem [shape: f32[4,32], index: 3, kind: input, shape index: {}]   ;;  %s1062_s4 = inlined_call_operand.vmem [shape: bf16[3,32,32], index: 4, kind: input, shape index: {}]   ;;  %s1063_s5 = inlined_call_operand.hbm [shape: bf16[32,128], index: 5, kind: input, shape index: {}]   ;;  %s1064_s6 = inlined_call_operand.vmem [shape: f32[1,128], index: 6, kind: input, shape index: {}]   ;;  %s1065_s7 = inlined_call_operand.vmem [shape: bf16[128,32], index: 7, kind: input, shape index: {}]   ;;  %s1066_s8 = inlined_call_operand.vmem [shape: f32[1,32], index: 8, kind: input, shape index: {}]   ;;  %s1067_s9 = inlined_call_operand.hbm [shape: bf16[32,128], index: 9, kind: input, shape index: {}]   ;;  %s1068_s10 = inlined_call_operand.vmem [shape: f32[1,128], index: 10, kind: input, shape index: {}]   ;;  %s1069_s11 = inlined_call_operand.hbm [shape: f32[2,128], index: 11, kind: output, shape index: {}]  }
   0x1   :  { %17 = vsyncpa [#allocation6], 0 }
   0x2   :  { %18 = vsyncpa [#allocation4], 0  ;;  %s33_s19 = sshll.u32 %s1063_s5, 4  ;;  %s842_s20 = smov [#allocation2]   ;;  %s34_s19 = int_to_ptr.hbm [resolvable:$true] %s33_s19 }
   0x3   :  { %s35_s21 = sshll.u32 %s842_s20, 4  ;;  %s52_s24 = sshll.u32 %s1067_s9, 4  ;;  %s36_s21 = int_to_ptr.vmem [resolvable:$true] %s35_s21  ;;  %s53_s24 = int_to_ptr.hbm [resolvable:$true] %s52_s24 }
   0x4   :  { %s843_s25 = smov 64   ;;  %s844_s26 = smov 4  }
   0x5   :  { %41 = dma.hbm_to_vmem [thread:$0]  %s34_s19, 256, %s36_s21, [#allocation3], %s843_s25, %s843_s25, %s844_s26  }
   0x6   :  { %s845_s27 = smov [#allocation5]  }
   0x7   :  { %s54_s28 = sshll.u32 %s845_s27, 4  ;;  %s55_s28 = int_to_ptr.vmem [resolvable:$true] %s54_s28 }
   0x8   :  { %60 = dma.hbm_to_vmem [thread:$0]  %s53_s24, 256, %s55_s28, [#allocation6], %s843_s25, %s843_s25, %s844_s26  }
   0x9   :  { %836 = dma.done.wait [#allocation3], 256  }
   0xa   :  { %837 = vsyncadd [#allocation3], 4294967040 }
   0xb   :  { %838 = dma.done.wait [#allocation6], 256  }
   0xc   :  { %839 = vsyncadd [#allocation6], 4294967040  ;;  %vm80_vm0 = vcmask 261120   ;;  %v917_v0 = vld [vmem:[%s1058_s0] sm:$0xff]  ;;  %v926_v3 = vld [vmem:[%s1058_s0 + $0x8] sm:$0xff]  ;;  %vm259_vm7 = vcmask 130048  }
   0xd   :  { %v81_v1 = vsel %vm80_vm0, %v917_v0, 0.0  ;;  %v89_v2 = vmul.f32 %v917_v0, %v917_v0  ;;  %v90_v5 = vmul.f32 %v926_v3, %v926_v3  ;;  %v84_v6 = vsel %vm80_vm0, %v926_v3, 0.0  ;;  %v715_v11 = vld [vmem:[%s1062_s4 + $0x8] sm:$0xff]  ;;  %v717_v12 = vld [vmem:[%s1062_s4 + $0x18] sm:$0xff]  ;;  %v714_v16 = vld [vmem:[%s1062_s4] sm:$0xff]  ;;  %s847_s29 = smov [#allocation7]  }
   0xe   :  { %82 = vadd.xlane.f32.xlu0 %v81_v1  ;;  %v719_v13 = vld [vmem:[%s1062_s4 + $0x28] sm:$0xff]  ;;  %161 = vmatpush.bf16.msra.mxu0 %v715_v11  ;;  %v716_v17 = vld [vmem:[%s1062_s4 + $0x10] sm:$0xff]  ;;  %v718_v19 = vld [vmem:[%s1062_s4 + $0x20] sm:$0xff]  ;;  %vm437_vm14 = vcmask 7168   ;;  %vm474_vm15 = vcmask 1041409   ;;  %s614_s9 = sshll.u32 %s847_s29, 4  ;;  %s615_s9 = int_to_ptr.vmem [resolvable:$true] %s614_s9 }
   0xf   :  { %v91_v4 = vsel %vm80_vm0, %v89_v2, 0.0  ;;  %v94_v7 = vsel %vm80_vm0, %v90_v5, 0.0  ;;  %192 = vmatpush.bf16.msra.mxu1 %v717_v12  ;;  %223 = vmatpush.bf16.msra.mxu2 %v719_v13  ;;  %v741_v42 = vld [vmem:[%s1061_s3] ss:$0 sm:$0xff]  ;;  %v742_v48 = vld [vmem:[%s1061_s3 + $0x1] ss:$0 sm:$0xff] }
  0x10   :  { %92 = vadd.xlane.f32.xlu1 %v91_v4  ;;  %v255_v1 = vld [vmem:[%s1060_s2] sm:$0xff]  ;;  %s616_s12 = sshll.u32 %s1069_s11, 4  ;;  %s617_s12 = int_to_ptr.hbm [resolvable:$true] %s616_s12 }
  0x12   :  { %162 = vmatpush.bf16.msra.mxu0 %v714_v16 }
  0x13   :  { %193 = vmatpush.bf16.msra.mxu1 %v716_v17  ;;  %224 = vmatpush.bf16.msra.mxu2 %v718_v19 }
  0x16   :  { %85 = vadd.xlane.f32.xlu0 %v84_v6 }
  0x18   :  { %95 = vadd.xlane.f32.xlu1 %v94_v7  ;;  %v256_v7 = vld [vmem:[%s1060_s2 + $0x8] sm:$0xff] }
  0x81   :  { %v83_v8 = vpop.xlane.xlu0 %82 }
  0x82   :  { %v87_v9 = vmul.f32 0.03125, %v83_v8 }
  0x83   :  { %v93_v10 = vpop.xlane.xlu1 %92 }
  0x84   :  { %v99_v14 = vmul.f32 %v87_v9, %v87_v9  ;;  %v97_v15 = vmul.f32 0.03125, %v93_v10  ;;  %v103_v39 = vsub.f32 %v917_v0, %v87_v9 }
  0x86   :  { %v101_v18 = vsub.f32 %v97_v15, %v99_v14 }
  0x88   :  { %v105_v20 = vadd.f32 1e-05, %v101_v18 }
  0x89   :  { %v86_v21 = vpop.xlane.xlu0 %85 }
  0x8a   :  { %748 = vrsqrt.f32 %v105_v20  ;;  %v88_v22 = vmul.f32 0.03125, %v86_v21  ;;  %vm113_vm2 = vweird.f32 %v105_v20 }
  0x8b   :  { %v96_v23 = vpop.xlane.xlu1 %95 }
  0x8c   :  { %v100_v24 = vmul.f32 %v88_v22, %v88_v22  ;;  %v98_v25 = vmul.f32 0.03125, %v96_v23  ;;  %v104_v44 = vsub.f32 %v926_v3, %v88_v22 }
  0x8e   :  { %v102_v26 = vsub.f32 %v98_v25, %v100_v24 }
  0x90   :  { %v749_v27 = vpop.eup %748  ;;  %v106_v28 = vadd.f32 1e-05, %v102_v26 }
  0x91   :  { %v108_v29 = vmul.f32 %v749_v27, %v105_v20  ;;  %vm114_vm1 = vweird.f32 %v749_v27 }
  0x92   :  { %750 = vrsqrt.f32 %v106_v28  ;;  %vm115_vm3 = vmor %vm113_vm2, %vm114_vm1  ;;  %vm123_vm5 = vweird.f32 %v106_v28 }
  0x93   :  { %v109_v30 = vmul.f32 %v749_v27, %v108_v29 }
  0x95   :  { %v110_v31 = vmul.f32 0.5, %v109_v30 }
  0x97   :  { %v111_v32 = vsub.f32 1.5, %v110_v31 }
  0x98   :  { %v751_v33 = vpop.eup %750 }
  0x99   :  { %v112_v34 = vmul.f32 %v749_v27, %v111_v32  ;;  %v118_v35 = vmul.f32 %v751_v33, %v106_v28  ;;  %vm124_vm4 = vweird.f32 %v751_v33  ;;  %v846_v28 = vmov 0  }
  0x9a   :  { %vm125_vm6 = vmor %vm123_vm5, %vm124_vm4  ;;  %739 = vset.pattern.permute.xlu1 %v846_v28  ;;  %738 = vset.pattern.permute.xlu0 %v846_v28 }
  0x9b   :  { %v119_v36 = vmul.f32 %v751_v33, %v118_v35  ;;  %v116_v37 = vsel %vm115_vm3, %v749_v27, %v112_v34  ;;  %740 = vset.pattern.permute.xlu2 %v846_v28  ;;  %v724_v28 = vld [vmem:[%s1065_s7 + $0x10] sm:$0xff] }
  0x9c   :  { %v127_v41 = vmul.f32 %v116_v37, %v103_v39 }
  0x9d   :  { %v120_v38 = vmul.f32 0.5, %v119_v36 }
  0x9e   :  { %v130_v47 = vmul.f32 %v741_v42, %v127_v41 }
  0x9f   :  { %v121_v40 = vsub.f32 1.5, %v120_v38  ;;  %v995_v38 = vld [vmem:[%s1059_s1 + $0x8] sm:$0xff] }
  0xa0   :  { %v133_v50 = vadd.f32 %v742_v48, %v130_v47 }
  0xa1   :  { %v122_v43 = vmul.f32 %v751_v33, %v121_v40 }
  0xa3   :  { %v126_v45 = vsel %vm125_vm6, %v751_v33, %v122_v43 }
  0xa4   :  { %v128_v46 = vmul.f32 %v126_v45, %v104_v44  ;;  %v721_v44 = vld [vmem:[#allocation2 + $0x8] sm:$0xff] }
  0xa5   :  { %387 = vmatpush.bf16.msrb.mxu1 %v721_v44 }
  0xa6   :  { %v131_v49 = vmul.f32 %v741_v42, %v128_v46  ;;  %v720_v46 = vld [vmem:[#allocation2] sm:$0xff] }
  0xa8   :  { %v134_v51 = vadd.f32 %v742_v48, %v131_v49 }
  0xa9   :  { %388 = vmatpush.bf16.msrb.mxu1 %v720_v46 }
  0xaa   :  { %v135_v52 = vpack.c.bf16 %v134_v51, %v133_v50 }
  0xac   :  { %635 = vmatmul.msk.bf16.vlgmr.msra.gmra.mxu0 %vm80_vm0, %v135_v52  ;;  %648 = vmatmul.msk.bf16.vlgmr.msra.gmra.mxu1 %vm80_vm0, %v135_v52 }
  0xad   :  { %661 = vmatmul.msk.bf16.vlgmr.msra.gmra.mxu2 %vm80_vm0, %v135_v52 }
 0x129   :  { %v195_v53 = vpop.f32.mrf.mxu1  ;;  %v164_v54 = vpop.f32.mrf.mxu0 }
 0x130   :  { %v226_v55 = vpop.f32.mrf.mxu2 }
 0x131   :  { %v197_v56 = vpop.f32.mrf.mxu1  ;;  %v166_v59 = vpop.f32.mrf.mxu0 }
 0x132   :  { %v232_v57 = vpack.c.bf16 %v197_v56, %v195_v53  ;;  %v231_v62 = vpack.c.bf16 %v166_v59, %v164_v54 }
 0x134   :  { %v237_v58 = vsel %vm80_vm0, %v232_v57, 0 }
 0x135   :  { %246 = vmatpush.bf16.xpose.msra.mxu3 %v237_v58 }
 0x138   :  { %v228_v60 = vpop.f32.mrf.mxu2 }
 0x139   :  { %v283_v61 = vpack.c.bf16 %v228_v60, %v226_v55 }
 0x13b   :  { %294 = vmatpush.bf16.msrb.mxu0 %v283_v61 }
 0x13c   :  { %662 = vmatmul.msk.bf16.vlgmr.msra.gmra.mxu3 %vm80_vm0, %v231_v62 }
 0x1bf   :  { %v248_v63 = vpop.f32.mrf.mxu3 }
 0x1c0   :  { %v253_v2 = vmul.f32 0.17677669, %v248_v63 }
 0x1c2   :  { %v257_v4 = vadd.f32 %v255_v1, %v253_v2 }
 0x1c4   :  { %v260_v5 = vsel %vm259_vm7, %v257_v4, -inf }
 0x1c5   :  { %261 = vmax.xlane.f32.xlu2 %v260_v5 }
 0x1c7   :  { %v250_v6 = vpop.f32.mrf.mxu3 }
 0x1c8   :  { %v254_v8 = vmul.f32 0.17677669, %v250_v6 }
 0x1ca   :  { %v258_v9 = vadd.f32 %v256_v7, %v254_v8  ;;  %v743_v7 = vld [vmem:[%s1061_s3 + $0x2] ss:$0 sm:$0xff] }
 0x1cc   :  { %v263_v10 = vsel %vm259_vm7, %v258_v9, -inf }
 0x1cd   :  { %264 = vmax.xlane.f32.xlu2 %v263_v10 }
 0x238   :  { %v262_v11 = vpop.xlane.xlu2 %261 }
 0x239   :  { %v266_v12 = vsub.f32 %v257_v4, %v262_v11 }
 0x23b   :  { %v268_v13 = vmul.f32 1.442695, %v266_v12 }
 0x23d   :  { %752 = vpow2.f32 %v268_v13  ;;  %v744_v13 = vld [vmem:[%s1061_s3 + $0x3] ss:$0 sm:$0xff] }
 0x240   :  { %v265_v14 = vpop.xlane.xlu2 %264 }
 0x241   :  { %v267_v15 = vsub.f32 %v258_v9, %v265_v14 }
 0x243   :  { %v753_v16 = vpop.eup %752  ;;  %v270_v17 = vmul.f32 1.442695, %v267_v15 }
 0x244   :  { %v272_v18 = vsel %vm259_vm7, %v753_v16, 0.0 }
 0x245   :  { %754 = vpow2.f32 %v270_v17  ;;  %273 = vadd.xlane.f32.xlu0 %v272_v18  ;;  %v729_v18 = vld [vmem:[%s1065_s7 + $0x38] sm:$0xff] }
 0x246   :  { %526 = vmatpush.bf16.msrb.mxu2 %v729_v18 }
 0x24b   :  { %v755_v19 = vpop.eup %754 }
 0x24c   :  { %v275_v20 = vsel %vm259_vm7, %v755_v19, 0.0 }
 0x24d   :  { %276 = vadd.xlane.f32.xlu1 %v275_v20  ;;  %v727_v20 = vld [vmem:[%s1065_s7 + $0x28] sm:$0xff] }
 0x2b8   :  { %v274_v21 = vpop.xlane.xlu0 %273 }
 0x2b9   :  { %756 = vrcp.f32 %v274_v21  ;;  %v726_v21 = vld [vmem:[%s1065_s7 + $0x20] sm:$0xff] }
 0x2bf   :  { %v757_v23 = vpop.eup %756 }
 0x2c0   :  { %v277_v22 = vpop.xlane.xlu1 %276  ;;  %v280_v25 = vmul.f32 %v757_v23, %v753_v16 }
 0x2c1   :  { %758 = vrcp.f32 %v277_v22  ;;  %v445_v22 = vsel %vm437_vm14, %v995_v38, 0.0 }
 0x2c2   :  { %v446_v23 = vrot.slane %v445_v22, 4 }
 0x2c7   :  { %v759_v24 = vpop.eup %758 }
 0x2c8   :  { %v281_v26 = vmul.f32 %v759_v24, %v755_v19  ;;  %v728_v19 = vld [vmem:[%s1065_s7 + $0x30] sm:$0xff]  ;;  %v725_v24 = vld [vmem:[%s1065_s7 + $0x18] sm:$0xff] }
 0x2c9   :  { %527 = vmatpush.bf16.msrb.mxu2 %v728_v19 }
 0x2ca   :  { %v282_v27 = vpack.c.bf16 %v281_v26, %v280_v25  ;;  %v447_v26 = vadd.f32 %v446_v23, %v445_v22 }
 0x2cc   :  { %663 = vmatmul.msk.bf16.vlgmr.msrb.gmra.mxu0 %vm259_vm7, %v282_v27 }
 0x2cd   :  { %528 = vmatpush.bf16.msrb.mxu2 %v727_v20 }
 0x2d1   :  { %529 = vmatpush.bf16.msrb.mxu2 %v726_v21 }
 0x2d5   :  { %530 = vmatpush.bf16.msrb.mxu2 %v725_v24 }
 0x2d9   :  { %531 = vmatpush.bf16.msrb.mxu2 %v724_v28 }
 0x349   :  { %v296_v29 = vpop.f32.mrf.mxu0 }
 0x34a   :  { %v977_v30 = vadd.f32 %v296_v29, %v917_v0  ;;  %v723_v29 = vld [vmem:[%s1065_s7 + $0x8] sm:$0xff] }
 0x34b   :  { %532 = vmatpush.bf16.msrb.mxu2 %v723_v29 }
 0x34c   :  { %v303_v31 = vsel %vm80_vm0, %v977_v30, 0.0  ;;  %v311_v32 = vmul.f32 %v977_v30, %v977_v30 }
 0x34d   :  { %304 = vadd.xlane.f32.xlu2 %v303_v31  ;;  %v448_v31 = vrot.slane %v447_v26, 2 }
 0x34e   :  { %v313_v33 = vsel %vm80_vm0, %v311_v32, 0.0 }
 0x34f   :  { %314 = vadd.xlane.f32.xlu1 %v313_v33  ;;  %v722_v33 = vld [vmem:[%s1065_s7] sm:$0xff] }
 0x350   :  { %533 = vmatpush.bf16.msrb.mxu2 %v722_v33 }
 0x351   :  { %v298_v34 = vpop.f32.mrf.mxu0 }
 0x352   :  { %v985_v35 = vadd.f32 %v298_v34, %v926_v3  ;;  %v1000_v3 = vld [vmem:[%s1059_s1] sm:$0xff] }
 0x353   :  { %v438_v25 = vsel %vm437_vm14, %v1000_v3, 0.0  ;;  %v745_v34 = vld [vmem:[%s1064_s6] ss:$0 sm:$0xff] }
 0x354   :  { %v306_v36 = vsel %vm80_vm0, %v985_v35, 0.0  ;;  %v312_v0 = vmul.f32 %v985_v35, %v985_v35  ;;  %v439_v27 = vrot.slane %v438_v25, 4 }
 0x355   :  { %307 = vadd.xlane.f32.xlu0 %v306_v36  ;;  %v449_v36 = vadd.f32 %v448_v31, %v447_v26 }
 0x356   :  { %v316_v37 = vsel %vm80_vm0, %v312_v0, 0.0  ;;  %v440_v32 = vadd.f32 %v439_v27, %v438_v25 }
 0x357   :  { %317 = vadd.xlane.f32.xlu2 %v316_v37 }
 0x358   :  { %v441_v0 = vrot.slane %v440_v32, 2 }
 0x368   :  { %404 = vperm.xlu1 %739, %v995_v38  }
 0x369   :  { %399 = vperm.xlu0 %738, %v1000_v3   ;;  %v442_v3 = vadd.f32 %v441_v0, %v440_v32 }
 0x36b   :  { %v443_v44 = vrot.slane %v442_v3, 1 }
 0x3c0   :  { %v305_v39 = vpop.xlane.xlu2 %304 }
 0x3c1   :  { %v309_v40 = vmul.f32 0.03125, %v305_v39  ;;  %v450_v39 = vrot.slane %v449_v36, 1 }
 0x3c2   :  { %v315_v41 = vpop.xlane.xlu1 %314 }
 0x3c3   :  { %v321_v42 = vmul.f32 %v309_v40, %v309_v40  ;;  %v319_v43 = vmul.f32 0.03125, %v315_v41  ;;  %v325_v4 = vsub.f32 %v977_v30, %v309_v40 }
 0x3c5   :  { %v323_v45 = vsub.f32 %v319_v43, %v321_v42  ;;  %v451_v42 = vadd.f32 %v450_v39, %v449_v36 }
 0x3c7   :  { %v327_v47 = vadd.f32 1e-05, %v323_v45  ;;  %553 = vperm.xlu2 %740, %v451_v42   ;;  %v747_v42 = vld [vmem:[%s1068_s10] ss:$0 sm:$0xff] }
 0x3c8   :  { %v308_v48 = vpop.xlane.xlu0 %307 }
 0x3c9   :  { %760 = vrsqrt.f32 %v327_v47  ;;  %v310_v49 = vmul.f32 0.03125, %v308_v48  ;;  %vm335_vm9 = vweird.f32 %v327_v47 }
 0x3ca   :  { %v318_v50 = vpop.xlane.xlu2 %317 }
 0x3cb   :  { %v322_v51 = vmul.f32 %v310_v49, %v310_v49  ;;  %v320_v52 = vmul.f32 0.03125, %v318_v50  ;;  %v326_v9 = vsub.f32 %v985_v35, %v310_v49  ;;  %v444_v49 = vadd.f32 %v443_v44, %v442_v3 }
 0x3cd   :  { %v324_v53 = vsub.f32 %v320_v52, %v322_v51 }
 0x3cf   :  { %v761_v54 = vpop.eup %760  ;;  %v328_v55 = vadd.f32 1e-05, %v324_v53  ;;  %548 = vperm.xlu2 %740, %v444_v49  }
 0x3d0   :  { %v330_v56 = vmul.f32 %v761_v54, %v327_v47  ;;  %vm336_vm8 = vweird.f32 %v761_v54 }
 0x3d1   :  { %762 = vrsqrt.f32 %v328_v55  ;;  %vm337_vm10 = vmor %vm335_vm9, %vm336_vm8  ;;  %vm345_vm12 = vweird.f32 %v328_v55 }
 0x3d2   :  { %v331_v57 = vmul.f32 %v761_v54, %v330_v56 }
 0x3d4   :  { %v332_v58 = vmul.f32 0.5, %v331_v57 }
 0x3d6   :  { %v333_v59 = vsub.f32 1.5, %v332_v58 }
 0x3d7   :  { %v763_v60 = vpop.eup %762 }
 0x3d8   :  { %v334_v61 = vmul.f32 %v761_v54, %v333_v59  ;;  %v340_v62 = vmul.f32 %v763_v60, %v328_v55  ;;  %vm346_vm11 = vweird.f32 %v763_v60 }
 0x3d9   :  { %vm347_vm13 = vmor %vm345_vm12, %vm346_vm11 }
 0x3da   :  { %v341_v63 = vmul.f32 %v763_v60, %v340_v62  ;;  %v338_v1 = vsel %vm337_vm10, %v761_v54, %v334_v61  ;;  %v405_v52 = vpop.permute.xlu1 %404 }
 0x3db   :  { %v349_v6 = vmul.f32 %v338_v1, %v325_v4  ;;  %v400_v41 = vpop.permute.xlu0 %399 }
 0x3dc   :  { %v342_v2 = vmul.f32 0.5, %v341_v63 }
 0x3dd   :  { %v352_v12 = vmul.f32 %v743_v7, %v349_v6 }
 0x3de   :  { %v343_v5 = vsub.f32 1.5, %v342_v2 }
 0x3df   :  { %v355_v15 = vadd.f32 %v744_v13, %v352_v12 }
 0x3e0   :  { %v344_v8 = vmul.f32 %v763_v60, %v343_v5 }
 0x3e2   :  { %v348_v10 = vsel %vm347_vm13, %v763_v60, %v344_v8  ;;  %v408_v8 = vmul.f32 %v405_v52, %v985_v35  ;;  %v746_v35 = vld [vmem:[%s1066_s8] ss:$0 sm:$0xff] }
 0x3e3   :  { %v350_v11 = vmul.f32 %v348_v10, %v326_v9  ;;  %v731_v10 = vld [vmem:[#allocation5 + $0x8] sm:$0xff] }
 0x3e4   :  { %601 = vmatpush.bf16.msrb.mxu3 %v731_v10 }
 0x3e5   :  { %v353_v14 = vmul.f32 %v743_v7, %v350_v11  ;;  %v407_v7 = vmul.f32 %v400_v41, %v977_v30  ;;  %v416_v11 = vsel %vm80_vm0, %v408_v8, 0.0 }
 0x3e7   :  { %v356_v16 = vadd.f32 %v744_v13, %v353_v14  ;;  %v409_v9 = vsel %vm80_vm0, %v407_v7, 0.0  ;;  %v730_v13 = vld [vmem:[#allocation5] sm:$0xff]  ;;  %v417_v14 = vrot.slane %v416_v11, 4 }
 0x3e8   :  { %v410_v12 = vrot.slane %v409_v9, 4  ;;  %602 = vmatpush.bf16.msrb.mxu3 %v730_v13 }
 0x3e9   :  { %v357_v17 = vpack.c.bf16 %v356_v16, %v355_v15  ;;  %v418_v16 = vadd.f32 %v417_v14, %v416_v11 }
 0x3ea   :  { %v411_v15 = vadd.f32 %v410_v12, %v409_v9 }
 0x3eb   :  { %672 = vmatmul.msk.bf16.vlgmr.msrb.gmra.mxu1 %vm80_vm0, %v357_v17  ;;  %v419_v19 = vrot.slane %v418_v16, 2 }
 0x3ec   :  { %v412_v17 = vrot.slane %v411_v15, 2 }
 0x3ed   :  { %v420_v21 = vadd.f32 %v419_v19, %v418_v16 }
 0x3ee   :  { %v413_v20 = vadd.f32 %v412_v17, %v411_v15 }
 0x3ef   :  { %v421_v22 = vrot.slane %v420_v21, 1 }
 0x3f0   :  { %v414_v30 = vrot.slane %v413_v20, 1 }
 0x3f1   :  { %v422_v27 = vadd.f32 %v421_v22, %v420_v21 }
 0x3f2   :  { %v415_v24 = vadd.f32 %v414_v30, %v413_v20 }
 0x421   :  { %v554_v18 = vpop.permute.xlu2 %553 }
 0x422   :  { %v560_v31 = vmul.f32 %v746_v35, %v554_v18 }
 0x429   :  { %v549_v23 = vpop.permute.xlu2 %548 }
 0x42a   :  { %v559_v26 = vmul.f32 %v746_v35, %v549_v23 }
 0x468   :  { %v390_v37 = vpop.f32.mrf.mxu1 }
 0x469   :  { %v391_v38 = vadd.f32 %v745_v34, %v390_v37 }
 0x46b   :  { %v395_v40 = vmax.f32 %v391_v38, 0.0 }
 0x46d   :  { %v423_v43 = vmul.f32 %v400_v41, %v395_v40 }
 0x46f   :  { %v425_v45 = vrot.slane %v423_v43, 4 }
 0x470   :  { %v392_v46 = vpop.f32.mrf.mxu1 }
 0x471   :  { %v426_v47 = vadd.f32 %v425_v45, %v423_v43  ;;  %v393_v48 = vadd.f32 %v745_v34, %v392_v46 }
 0x473   :  { %v427_v50 = vrot.slane %v426_v47, 2  ;;  %v396_v51 = vmax.f32 %v393_v48, 0.0 }
 0x475   :  { %v428_v53 = vadd.f32 %v427_v50, %v426_v47  ;;  %v424_v54 = vmul.f32 %v405_v52, %v396_v51 }
 0x477   :  { %v431_v55 = vrot.slane %v424_v54, 4  ;;  %v429_v56 = vrot.slane %v428_v53, 1 }
 0x479   :  { %v432_v57 = vadd.f32 %v431_v55, %v424_v54  ;;  %v430_v59 = vadd.f32 %v429_v56, %v428_v53 }
 0x47b   :  { %v433_v58 = vrot.slane %v432_v57, 2  ;;  %v452_v63 = vpack.c.bf16 %v430_v59, %v430_v59 }
 0x47d   :  { %v434_v60 = vadd.f32 %v433_v58, %v432_v57  ;;  %v472_v2 = vunpack.c.l.b16 %v452_v63 }
 0x47f   :  { %v435_v61 = vrot.slane %v434_v60, 1 }
 0x481   :  { %v436_v62 = vadd.f32 %v435_v61, %v434_v60 }
 0x483   :  { %v453_v1 = vpack.c.bf16 %v436_v62, %v436_v62 }
 0x485   :  { %v473_v4 = vunpack.c.l.b16 %v453_v1 }
 0x487   :  { %v475_v5 = vsel %vm474_vm15, %v473_v4, %v472_v2 }
 0x488   :  { %v476_v6 = vpack.c.b16 %v475_v5, %v475_v5 }
 0x48a   :  { %534 = vmatmul.bf16.vlgmr.msrb.gmra.mxu2 %v476_v6 }
 0x50d   :  { %v535_v25 = vpop.f32.mrf.mxu2 }
 0x50e   :  { %v540_v28 = vrot.slane %v535_v25, 1  ;;  %v543_v29 = vadd.f32 %v535_v25, %v415_v24 }
 0x510   :  { %v544_v32 = vadd.f32 %v540_v28, %v422_v27  ;;  %v561_v33 = vadd.f32 %v559_v26, %v543_v29 }
 0x512   :  { %v562_v34 = vadd.f32 %v560_v31, %v544_v32  ;;  %v563_v36 = vpack.c.bf16 %v561_v33, %v561_v33 }
 0x514   :  { %v564_v0 = vpack.c.bf16 %v562_v34, %v562_v34  ;;  %v575_v3 = vunpack.c.l.b16 %v563_v36 }
 0x515   :  { %v537_v37 = vpop.f32.mrf.mxu2 }
 0x516   :  { %v576_v38 = vunpack.c.l.b16 %v564_v0 }
 0x518   :  { %v577_v39 = vrot.slane %v576_v38, 7 }
 0x51a   :  { %v578_v40 = vsel %vm474_vm15, %v577_v39, %v575_v3 }
 0x51b   :  { %v579_v41 = vpack.c.b16 %v578_v40, %v578_v40 }
 0x51d   :  { %713 = vmatmul.msk.bf16.vlgmr.msrb.gmra.mxu3 %vm80_vm0, %v579_v41 }
 0x5a0   :  { %v604_v43 = vpop.f32.mrf.mxu3 }
 0x5a1   :  { %v605_v44 = vadd.f32 %v747_v42, %v604_v43 }
 0x5a3   :  { %608 = vst [vmem:[#allocation7] sm:$0x3] %v605_v44 }
 0x5a4   :  { %619 = dma.vmem_to_hbm [thread:$0]  %s615_s9, 32, %s617_s12, [#allocation4]  }
 0x5a8   :  { %v606_v45 = vpop.f32.mrf.mxu3 }
 0x5a9   :  { %840 = dma.done.wait [#allocation4], 32  }
 0x5aa   :  { %841 = vsyncadd [#allocation4], 4294967264 }
 0x5ab   :  { %624 = vsyncpa [#allocation3], 1 }
 0x5ac   :  { %625 = vsyncpa [#allocation6], 1 }
 0x5ad   :  { %626 = vsyncpa [#allocation4], 1 }

</bundles_post_ra>
